<compile_context>
chip_gen: v7x
topology: tpu7x:2x2x1
jax: 0.10.0
libtpu: 0.0.40
codegen_flags: <defaults>
</compile_context>

<pallas_src>
import functools

import numpy as np
import jax
import jax.numpy as jnp
from jax import lax
from jax.experimental import pallas as pl
from jax.experimental.pallas import tpu as pltpu


_LANES = 128


# ----------------------------------------------------------------------------
# Pallas kernel: post-sort Lovasz math for BOTH symmetric terms in one pass.
# ----------------------------------------------------------------------------
def _build_kernel(P, BR, nblk):
    """P: true flattened length per image; BR: rows per tile; nblk: blocks."""
    BLK = BR * _LANES
    f32 = jnp.float32

    def kernel(gts_ref, tri_ref, low_ref, err_ref, gt_ref, loss_ref,
               carry_ref, acca_ref, accb_ref):
        b = pl.program_id(0)          # image (parallel)
        i = pl.program_id(1)          # block of the sorted stream (sequential)

        @pl.when(i == 0)
        def _init():
            carry_ref[...] = jnp.zeros_like(carry_ref)
            acca_ref[...] = jnp.zeros_like(acca_ref)
            accb_ref[...] = jnp.zeros_like(accb_ref)

        ii = lax.broadcasted_iota(jnp.int32, (BR, _LANES), 0)
        jj = lax.broadcasted_iota(jnp.int32, (BR, _LANES), 1)
        lane0 = jj == 0

        e_relu = jnp.maximum(err_ref[...], 0.0)          # relu(errors_sorted)
        g_bf = gt_ref[...]                               # gt_sorted, 0/1 bf16

        # Inclusive cumsum of gt over the sorted stream:
        #   one (BR,128)x(128,128) bf16 matmul for the within-row prefix,
        #   one (BR,BR)x(BR,128) bf16 matmul (strict lower-triangular constant)
        #   for the across-row carry, plus the scalar carry from prior blocks.
        cs_row = jnp.dot(g_bf, tri_ref[...], preferred_element_type=f32)
        rowsum_bf = cs_row[:, _LANES - 1:_LANES].astype(jnp.bfloat16)   # (BR,1)
        rows_prev = jnp.dot(low_ref[...],
                            jnp.broadcast_to(rowsum_bf, (BR, _LANES)),
                            preferred_element_type=f32)                 # (BR,128)
        carry_in = carry_ref[...]                                       # (1,1)
        cs_a = cs_row + rows_prev + carry_in

        gts_a = gts_ref[b].astype(f32)                   # total positives
        gts_b = float(P) - gts_a                         # positives of 1 - t
        idx1 = (i * BLK + ii * _LANES + jj + 1).astype(f32)   # 1-based position

        # Jaccard values for both symmetric terms (shared errors).
        jac_a = 1.0 - (gts_a - cs_a) * pl.reciprocal(gts_a + (idx1 - cs_a))
        cs_b = idx1 - cs_a
        jac_b = 1.0 - (gts_b - cs_b) * pl.reciprocal(gts_b + cs_a)

        # Lovasz gradient = jac - prev(jac) in flattened sorted order.
        # Lanes c>=1: prev via an XLU lane roll. Lane 0 (row/block boundary):
        # recomputed analytically from the running cumsum (exact same formula).
        iic = lax.broadcasted_iota(jnp.int32, (BR, 1), 0)
        pcs = carry_in + rows_prev[:, 0:1]               # cs at previous row end
        pidx = (i * BLK + iic * _LANES).astype(f32)      # its 1-based index
        pjac_a = 1.0 - (gts_a - pcs) * pl.reciprocal(gts_a + (pidx - pcs))
        pjac_b = 1.0 - (gts_b - (pidx - pcs)) * pl.reciprocal(gts_b + pcs)

        first = lane0 & (ii == 0) & (i == 0)             # global position 0

        def grad(jac, pjac_col):
            prev = jnp.where(lane0, pjac_col, pltpu.roll(jac, shift=1, axis=1))
            return jac - jnp.where(first, 0.0, prev)

        # Per-lane partial dots; cross-lane reduce deferred to the last block.
        acca_ref[...] += jnp.sum(e_relu * grad(jac_a, pjac_a),
                                 axis=0, keepdims=True)
        accb_ref[...] += jnp.sum(e_relu * grad(jac_b, pjac_b),
                                 axis=0, keepdims=True)

        # Sequential carry: inclusive cumsum at the last element of this block.
        carry_ref[...] = cs_a[BR - 1:BR, _LANES - 1:_LANES]

        @pl.when(i == nblk - 1)
        def _finish():
            tot = 0.5 * (jnp.sum(acca_ref[...], axis=1, keepdims=True)
                         + jnp.sum(accb_ref[...], axis=1, keepdims=True))
            loss_ref[...] = jnp.broadcast_to(tot.reshape(1, 1, 1),
                                             (1, 8, _LANES))

    return kernel


def _round_up(n, m):
    return -(-n // m) * m


# ----------------------------------------------------------------------------
# JAX wrapper: hinge errors, shared payload sort, batched kernel call.
# ----------------------------------------------------------------------------
@functools.partial(jax.jit, static_argnames=("block_rows",))
def _symmetric_lovasz_batched(logits, labels, *, block_rows=512):
    """Per-row symmetric Lovasz hinge losses. logits/labels: (B, P)."""
    assert block_rows % 16 == 0
    B, P = logits.shape
    logits = logits.astype(jnp.float32)
    labels = labels.astype(jnp.float32)

    errors = 1.0 - logits * (2.0 * labels - 1.0)         # identical for both terms
    gts = jnp.sum(labels, axis=1).astype(jnp.int32)      # positives per image

    rows_needed = max(1, -(-P // _LANES))
    BR = block_rows if rows_needed >= block_rows else _round_up(rows_needed, 16)
    rows = _round_up(rows_needed, BR)
    nblk = rows // BR
    pad = rows * _LANES - P

    # Pad BEFORE the sort with a huge sentinel so padded entries sort last
    # (error -> -sentinel, relu -> 0, gt -> 0: they contribute nothing).
    neg = jnp.pad(-errors, ((0, 0), (0, pad)), constant_values=3e38)
    lab = jnp.pad(labels, ((0, 0), (0, pad)), constant_values=0.0)
    # TODO(synk): global descending sort stays in XLA (no Pallas TPU sort);
    # labels ride along as a sort payload so no gather passes are needed.
    neg_sorted, gt_sorted = lax.sort((neg, lab), dimension=1, num_keys=1)
    e3 = (-neg_sorted).reshape(B, rows, _LANES)
    g3 = gt_sorted.astype(jnp.bfloat16).reshape(B, rows, _LANES)   # 0/1: lossless

    # Structured constants, resident in VMEM (constant index_map).
    c = np.arange(_LANES)
    tri_incl = jnp.asarray(c[:, None] <= c[None, :], dtype=jnp.bfloat16)
    r = np.arange(BR)
    low_strict = jnp.asarray(r[None, :] < r[:, None], dtype=jnp.bfloat16)

    flops_step = 2 * BR * _LANES * _LANES + 2 * BR * BR * _LANES + 60 * BR * _LANES
    cost = pl.CostEstimate(
        flops=int(B * nblk * flops_step),
        transcendentals=int(B * nblk * (2 * BR * _LANES + 2 * BR)),
        bytes_accessed=int(B * rows * _LANES * 6
                           + BR * BR * 2 + _LANES * _LANES * 2
                           + B * 8 * _LANES * 4),
    )

    grid_spec = pltpu.PrefetchScalarGridSpec(
        num_scalar_prefetch=1,                  # gts -> SMEM
        grid=(B, nblk),
        in_specs=[
            pl.BlockSpec((_LANES, _LANES), lambda b, i, gts: (0, 0)),   # tri_incl
            pl.BlockSpec((BR, BR), lambda b, i, gts: (0, 0)),           # low_strict
            pl.BlockSpec((None, BR, _LANES), lambda b, i, gts: (b, i, 0)),  # errors
            pl.BlockSpec((None, BR, _LANES), lambda b, i, gts: (b, i, 0)),  # gt
        ],
        out_specs=pl.BlockSpec((1, 8, _LANES), lambda b, i, gts: (b, 0, 0)),
        scratch_shapes=[
            pltpu.VMEM((1, 1), jnp.float32),        # running cumsum carry
            pltpu.VMEM((1, _LANES), jnp.float32),   # per-lane partial dot, term A
            pltpu.VMEM((1, _LANES), jnp.float32),   # per-lane partial dot, term B
        ],
    )

    out = pl.pallas_call(
        _build_kernel(P, BR, nblk),
        out_shape=jax.ShapeDtypeStruct((B, 8, _LANES), jnp.float32),
        grid_spec=grid_spec,
        compiler_params=pltpu.CompilerParams(
            dimension_semantics=("parallel", "arbitrary")),
        cost_estimate=cost,
    )(gts, tri_incl, low_strict, e3, g3)
    return out[:, 0, 0]                                   # (B,)


def symmetric_lovasz(outputs, targets, per_image=False, *, block_rows=512):
    outputs = jnp.asarray(outputs)
    targets = jnp.asarray(targets)
    if per_image:
        B = outputs.shape[0]
        losses = _symmetric_lovasz_batched(outputs.reshape(B, -1),
                                           targets.reshape(B, -1),
                                           block_rows=block_rows)
        return jnp.mean(losses)
    losses = _symmetric_lovasz_batched(outputs.reshape(1, -1),
                                       targets.reshape(1, -1),
                                       block_rows=block_rows)
    return losses[0]


class SymmetricLovasz:
    """JAX/Pallas equivalent of the PyTorch SymmetricLovasz module (forward)."""

    def __init__(self, per_image=False):
        self.per_image = per_image

    def __call__(self, outputs_soft, label_batch):
        return symmetric_lovasz(outputs_soft, label_batch,
                                per_image=self.per_image)


# ----------------------------------------------------------------------------
# Pure-JAX reference (mirrors the PyTorch code path: two lovasz_hinge calls
# with their own sorts and cumsum-based Lovasz gradient).
# ----------------------------------------------------------------------------
def _lovasz_grad_ref(gt_sorted):
    gts = jnp.sum(gt_sorted)
    intersection = gts - jnp.cumsum(gt_sorted)
    union = gts + jnp.cumsum(1.0 - gt_sorted)
    jaccard = 1.0 - intersection / union
    return jnp.concatenate([jaccard[:1], jaccard[1:] - jaccard[:-1]])


def _lovasz_hinge_flat_ref(logits, labels):
    signs = 2.0 * labels - 1.0
    errors = 1.0 - logits * signs
    order = jnp.argsort(-errors)
    errors_sorted = jnp.take(errors, order)
    gt_sorted = jnp.take(labels, order)
    grad = _lovasz_grad_ref(gt_sorted)
    return jnp.dot(jnp.maximum(errors_sorted, 0.0), grad)


def symmetric_lovasz_ref(outputs, targets, per_image=False):
    o = jnp.asarray(outputs, jnp.float32)
    t = jnp.asarray(targets, jnp.float32)

    def sym(of, tf):
        of = jnp.reshape(of, (-1,))
        tf = jnp.reshape(tf, (-1,))
        return 0.5 * (_lovasz_hinge_flat_ref(of, tf)
                      + _lovasz_hinge_flat_ref(-of, 1.0 - tf))

    if per_image:
        return jnp.mean(jnp.stack([sym(o[b], t[b]) for b in range(o.shape[0])]))
    return sym(o, t)


if __name__ == "__main__":
    key = jax.random.PRNGKey(0)
    k1, k2, k3, k4 = jax.random.split(key, 4)

    # Binary-segmentation style inputs: logits + {0,1} labels, NCHW with C=1.
    logits = jax.random.normal(k1, (2, 1, 16, 16), dtype=jnp.float32) * 2.0
    labels = (jax.random.uniform(k2, (2, 1, 16, 16)) > 0.5).astype(jnp.float32)

    model = SymmetricLovasz(per_image=False)
    out = jax.block_until_ready(model(logits, labels))
    ref = jax.block_until_ready(symmetric_lovasz_ref(logits, labels, per_image=False))
    assert np.isfinite(float(out)), "symmetric Lovasz loss is not finite"
    np.testing.assert_allclose(float(out), float(ref), rtol=1e-4, atol=1e-5)

    # per_image=True path (constructor option of the original module).
    model_pi = SymmetricLovasz(per_image=True)
    out_pi = jax.block_until_ready(model_pi(logits, labels))
    ref_pi = jax.block_until_ready(symmetric_lovasz_ref(logits, labels, per_image=True))
    np.testing.assert_allclose(float(out_pi), float(ref_pi), rtol=1e-4, atol=1e-5)

    # Multi-block sequential-carry path (small block_rows keeps shapes tiny).
    logits_l = jax.random.normal(k3, (1, 1, 144, 144), dtype=jnp.float32)
    labels_l = (jax.random.uniform(k4, (1, 1, 144, 144)) > 0.3).astype(jnp.float32)
    out_l = jax.block_until_ready(symmetric_lovasz(logits_l, labels_l, block_rows=64))
    ref_l = jax.block_until_ready(symmetric_lovasz_ref(logits_l, labels_l))
    np.testing.assert_allclose(float(out_l), float(ref_l), rtol=1e-4, atol=1e-5)

    # Batched per-image path with several blocks per image (parallel batch axis).
    logits_b = jax.random.normal(k3, (2, 1, 96, 96), dtype=jnp.float32)
    labels_b = (jax.random.uniform(k4, (2, 1, 96, 96)) > 0.4).astype(jnp.float32)
    out_b = jax.block_until_ready(
        symmetric_lovasz(logits_b, labels_b, per_image=True, block_rows=32))
    ref_b = jax.block_until_ready(
        symmetric_lovasz_ref(logits_b, labels_b, per_image=True))
    np.testing.assert_allclose(float(out_b), float(ref_b), rtol=1e-4, atol=1e-5)

    print("KERNEL_OK")
</pallas_src>

<mosaic_0001>
module attributes {stable_mosaic.version = 11 : i64} {
  func.func @kernel(%arg0: i32, %arg1: i32, %arg2: memref<1xi32, #tpu.memory_space<smem>>, %arg3: memref<128x128xbf16, #tpu.memory_space<vmem>>, %arg4: memref<16x16xbf16, #tpu.memory_space<vmem>>, %arg5: memref<1x16x128xf32, #tpu.memory_space<vmem>>, %arg6: memref<1x16x128xbf16, #tpu.memory_space<vmem>>, %arg7: memref<1x8x128xf32, #tpu.memory_space<vmem>>, %arg8: memref<1x1xf32, #tpu.memory_space<vmem>>, %arg9: memref<1x128xf32, #tpu.memory_space<vmem>>, %arg10: memref<1x128xf32, #tpu.memory_space<vmem>>) attributes {dimension_semantics = [#tpu.dimension_semantics<parallel>, #tpu.dimension_semantics<arbitrary>], iteration_bounds = array<i64: 1, 1>, scalar_prefetch = 1 : i64, scratch_operands = 3 : i64, tpu.core_type = #tpu.core_type<tc>, window_params = [{pipeline_mode = #tpu.pipeline_mode<synchronous>, transform_indices = @transform_0, window_bounds = array<i64: 128, 128>}, {pipeline_mode = #tpu.pipeline_mode<synchronous>, transform_indices = @transform_1, window_bounds = array<i64: 16, 16>}, {transform_indices = @transform_2, window_bounds = array<i64: 1, 16, 128>}, {transform_indices = @transform_3, window_bounds = array<i64: 1, 16, 128>}, {transform_indices = @transform_4, window_bounds = array<i64: 1, 8, 128>}]} {
    %c0_i32 = arith.constant 0 : i32
    %0 = arith.cmpi eq, %arg1, %c0_i32 : i32
    %1 = arith.extui %0 : i1 to i32
    %c0_i32_0 = arith.constant 0 : i32
    %2 = arith.cmpi ne, %1, %c0_i32_0 : i32
    scf.if %2 {
      %cst_42 = arith.constant 0.000000e+00 : f32
      %121 = vector.broadcast %cst_42 : f32 to vector<1x1xf32>
      %c0_43 = arith.constant 0 : index
      %c0_44 = arith.constant 0 : index
      %122 = vector.load %arg8[%c0_43, %c0_44] : memref<1x1xf32, #tpu.memory_space<vmem>>, vector<1x1xf32>
      tpu.vector_store %arg8[%c0_43, %c0_44], %121 {strides = array<i32>} : memref<1x1xf32, #tpu.memory_space<vmem>>, vector<1x1xf32>,
      %cst_45 = arith.constant 0.000000e+00 : f32
      %123 = vector.broadcast %cst_45 : f32 to vector<1x128xf32>
      %c0_46 = arith.constant 0 : index
      %c0_47 = arith.constant 0 : index
      %124 = vector.load %arg9[%c0_46, %c0_47] : memref<1x128xf32, #tpu.memory_space<vmem>>, vector<1x128xf32>
      tpu.vector_store %arg9[%c0_46, %c0_47], %123 {strides = array<i32>} : memref<1x128xf32, #tpu.memory_space<vmem>>, vector<1x128xf32>,
      %cst_48 = arith.constant 0.000000e+00 : f32
      %125 = vector.broadcast %cst_48 : f32 to vector<1x128xf32>
      %c0_49 = arith.constant 0 : index
      %c0_50 = arith.constant 0 : index
      %126 = vector.load %arg10[%c0_49, %c0_50] : memref<1x128xf32, #tpu.memory_space<vmem>>, vector<1x128xf32>
      tpu.vector_store %arg10[%c0_49, %c0_50], %125 {strides = array<i32>} : memref<1x128xf32, #tpu.memory_space<vmem>>, vector<1x128xf32>,
    } else {
    }
    %3 = tpu.iota {dimensions = array<i32: 0>} : vector<16x128xi32>
    %4 = tpu.iota {dimensions = array<i32: 1>} : vector<16x128xi32>
    %c0_i32_1 = arith.constant 0 : i32
    %5 = vector.broadcast %c0_i32_1 : i32 to vector<16x128xi32>
    %6 = arith.cmpi eq, %4, %5 : vector<16x128xi32>
    %c0 = arith.constant 0 : index
    %c0_2 = arith.constant 0 : index
    %c0_3 = arith.constant 0 : index
    %7 = vector.load %arg5[%c0, %c0_2, %c0_3] : memref<1x16x128xf32, #tpu.memory_space<vmem>>, vector<1x16x128xf32>
    %8 = vector.shape_cast %7 : vector<1x16x128xf32> to vector<16x128xf32>
    %cst = arith.constant 0.000000e+00 : f32
    %9 = vector.broadcast %cst : f32 to vector<16x128xf32>
    %10 = arith.maximumf %8, %9 : vector<16x128xf32>
    %c0_4 = arith.constant 0 : index
    %c0_5 = arith.constant 0 : index
    %c0_6 = arith.constant 0 : index
    %11 = vector.load %arg6[%c0_4, %c0_5, %c0_6] : memref<1x16x128xbf16, #tpu.memory_space<vmem>>, vector<1x16x128xbf16>
    %12 = vector.shape_cast %11 : vector<1x16x128xbf16> to vector<16x128xbf16>
    %c0_7 = arith.constant 0 : index
    %c0_8 = arith.constant 0 : index
    %13 = vector.load %arg3[%c0_7, %c0_8] : memref<128x128xbf16, #tpu.memory_space<vmem>>, vector<128x128xbf16>
    %cst_9 = arith.constant dense<0.000000e+00> : vector<16x128xf32>
    %14 = tpu.matmul %12, %13, %cst_9 {dimension_numbers = #tpu.dot_dimension_numbers<[1], [0], [0], [1], [0, 0, 1, 1], [], []>} : vector<16x128xbf16>, vector<128x128xbf16>, vector<16x128xf32> -> vector<16x128xf32>
    %15 = vector.extract_strided_slice %14 {offsets = [0, 127], sizes = [16, 1], strides = [1, 1]} : vector<16x128xf32> to vector<16x1xf32>
    %16 = arith.truncf %15 : vector<16x1xf32> to vector<16x1xbf16>
    %c0_10 = arith.constant 0 : index
    %c0_11 = arith.constant 0 : index
    %17 = vector.load %arg4[%c0_10, %c0_11] : memref<16x16xbf16, #tpu.memory_space<vmem>>, vector<16x16xbf16>
    %18 = vector.shape_cast %16 : vector<16x1xbf16> to vector<16x1xbf16>
    %19 = vector.broadcast %18 : vector<16x1xbf16> to vector<16x128xbf16>
    %cst_12 = arith.constant dense<0.000000e+00> : vector<16x128xf32>
    %20 = tpu.matmul %17, %19, %cst_12 {dimension_numbers = #tpu.dot_dimension_numbers<[1], [0], [0], [1], [0, 0, 1, 1], [], []>} : vector<16x16xbf16>, vector<16x128xbf16>, vector<16x128xf32> -> vector<16x128xf32>
    %c0_13 = arith.constant 0 : index
    %c0_14 = arith.constant 0 : index
    %21 = vector.load %arg8[%c0_13, %c0_14] : memref<1x1xf32, #tpu.memory_space<vmem>>, vector<1x1xf32>
    %22 = arith.addf %14, %20 : vector<16x128xf32>
    %23 = vector.broadcast %21 : vector<1x1xf32> to vector<16x128xf32>
    %24 = arith.addf %22, %23 : vector<16x128xf32>
    %25 = arith.index_cast %arg0 : i32 to index
    %26 = memref.load %arg2[%25] : memref<1xi32, #tpu.memory_space<smem>>
    %27 = arith.sitofp %26 : i32 to f32
    %cst_15 = arith.constant 5.120000e+02 : f32
    %28 = arith.subf %cst_15, %27 : f32
    %c2048_i32 = arith.constant 2048 : i32
    %29 = arith.muli %arg1, %c2048_i32 : i32
    %c128_i32 = arith.constant 128 : i32
    %30 = vector.broadcast %c128_i32 : i32 to vector<16x128xi32>
    %31 = arith.muli %3, %30 : vector<16x128xi32>
    %32 = vector.broadcast %29 : i32 to vector<16x128xi32>
    %33 = arith.addi %32, %31 : vector<16x128xi32>
    %34 = arith.addi %33, %4 : vector<16x128xi32>
    %c1_i32 = arith.constant 1 : i32
    %35 = vector.broadcast %c1_i32 : i32 to vector<16x128xi32>
    %36 = arith.addi %34, %35 : vector<16x128xi32>
    %37 = arith.sitofp %36 : vector<16x128xi32> to vector<16x128xf32>
    %38 = vector.broadcast %27 : f32 to vector<16x128xf32>
    %39 = arith.subf %38, %24 : vector<16x128xf32>
    %40 = arith.subf %37, %24 : vector<16x128xf32>
    %41 = vector.broadcast %27 : f32 to vector<16x128xf32>
    %42 = arith.addf %41, %40 : vector<16x128xf32>
    %43 = tpu.reciprocal %42 : vector<16x128xf32> -> vector<16x128xf32>
    %44 = arith.mulf %39, %43 : vector<16x128xf32>
    %cst_16 = arith.constant 1.000000e+00 : f32
    %45 = vector.broadcast %cst_16 : f32 to vector<16x128xf32>
    %46 = arith.subf %45, %44 : vector<16x128xf32>
    %47 = arith.subf %37, %24 : vector<16x128xf32>
    %48 = vector.broadcast %28 : f32 to vector<16x128xf32>
    %49 = arith.subf %48, %47 : vector<16x128xf32>
    %50 = vector.broadcast %28 : f32 to vector<16x128xf32>
    %51 = arith.addf %50, %24 : vector<16x128xf32>
    %52 = tpu.reciprocal %51 : vector<16x128xf32> -> vector<16x128xf32>
    %53 = arith.mulf %49, %52 : vector<16x128xf32>
    %cst_17 = arith.constant 1.000000e+00 : f32
    %54 = vector.broadcast %cst_17 : f32 to vector<16x128xf32>
    %55 = arith.subf %54, %53 : vector<16x128xf32>
    %56 = tpu.iota {dimensions = array<i32: 0>} : vector<16x1xi32>
    %57 = vector.extract_strided_slice %20 {offsets = [0, 0], sizes = [16, 1], strides = [1, 1]} : vector<16x128xf32> to vector<16x1xf32>
    %58 = vector.broadcast %21 : vector<1x1xf32> to vector<16x1xf32>
    %59 = arith.addf %58, %57 : vector<16x1xf32>
    %c2048_i32_18 = arith.constant 2048 : i32
    %60 = arith.muli %arg1, %c2048_i32_18 : i32
    %c128_i32_19 = arith.constant 128 : i32
    %61 = vector.broadcast %c128_i32_19 : i32 to vector<16x1xi32>
    %62 = arith.muli %56, %61 : vector<16x1xi32>
    %63 = vector.broadcast %60 : i32 to vector<16x1xi32>
    %64 = arith.addi %63, %62 : vector<16x1xi32>
    %65 = arith.sitofp %64 : vector<16x1xi32> to vector<16x1xf32>
    %66 = vector.broadcast %27 : f32 to vector<16x1xf32>
    %67 = arith.subf %66, %59 : vector<16x1xf32>
    %68 = arith.subf %65, %59 : vector<16x1xf32>
    %69 = vector.broadcast %27 : f32 to vector<16x1xf32>
    %70 = arith.addf %69, %68 : vector<16x1xf32>
    %71 = tpu.reciprocal %70 : vector<16x1xf32> -> vector<16x1xf32>
    %72 = arith.mulf %67, %71 : vector<16x1xf32>
    %cst_20 = arith.constant 1.000000e+00 : f32
    %73 = vector.broadcast %cst_20 : f32 to vector<16x1xf32>
    %74 = arith.subf %73, %72 : vector<16x1xf32>
    %75 = arith.subf %65, %59 : vector<16x1xf32>
    %76 = vector.broadcast %28 : f32 to vector<16x1xf32>
    %77 = arith.subf %76, %75 : vector<16x1xf32>
    %78 = vector.broadcast %28 : f32 to vector<16x1xf32>
    %79 = arith.addf %78, %59 : vector<16x1xf32>
    %80 = tpu.reciprocal %79 : vector<16x1xf32> -> vector<16x1xf32>
    %81 = arith.mulf %77, %80 : vector<16x1xf32>
    %cst_21 = arith.constant 1.000000e+00 : f32
    %82 = vector.broadcast %cst_21 : f32 to vector<16x1xf32>
    %83 = arith.subf %82, %81 : vector<16x1xf32>
    %c0_i32_22 = arith.constant 0 : i32
    %84 = vector.broadcast %c0_i32_22 : i32 to vector<16x128xi32>
    %85 = arith.cmpi eq, %3, %84 : vector<16x128xi32>
    %86 = arith.andi %6, %85 : vector<16x128xi1>
    %c0_i32_23 = arith.constant 0 : i32
    %87 = arith.cmpi eq, %arg1, %c0_i32_23 : i32
    %88 = vector.broadcast %87 : i1 to vector<16x128xi1>
    %89 = arith.andi %86, %88 : vector<16x128xi1>
    %c0_24 = arith.constant 0 : index
    %c0_25 = arith.constant 0 : index
    %90 = vector.load %arg9[%c0_24, %c0_25] : memref<1x128xf32, #tpu.memory_space<vmem>>, vector<1x128xf32>
    %c1_i32_26 = arith.constant 1 : i32
    %91 = tpu.dynamic_rotate %46 by %c1_i32_26 dim 1 : vector<16x128xf32>, i32 -> vector<16x128xf32>
    %92 = vector.shape_cast %74 : vector<16x1xf32> to vector<16x1xf32>
    %93 = vector.broadcast %92 : vector<16x1xf32> to vector<16x128xf32>
    %94 = arith.select %6, %93, %91 : vector<16x128xi1>, vector<16x128xf32>
    %cst_27 = arith.constant 0.000000e+00 : f32
    %95 = vector.broadcast %cst_27 : f32 to vector<16x128xf32>
    %96 = arith.select %89, %95, %94 : vector<16x128xi1>, vector<16x128xf32>
    %97 = arith.subf %46, %96 : vector<16x128xf32>
    %98 = arith.mulf %10, %97 : vector<16x128xf32>
    %cst_28 = arith.constant dense<0.000000e+00> : vector<128xf32>
    %99 = vector.multi_reduction <add>, %98, %cst_28 [0] : vector<16x128xf32> to vector<128xf32>
    %100 = vector.shape_cast %99 : vector<128xf32> to vector<1x128xf32>
    %101 = arith.addf %90, %100 : vector<1x128xf32>
    %c0_29 = arith.constant 0 : index
    %c0_30 = arith.constant 0 : index
    %102 = vector.load %arg9[%c0_29, %c0_30] : memref<1x128xf32, #tpu.memory_space<vmem>>, vector<1x128xf32>
    tpu.vector_store %arg9[%c0_29, %c0_30], %101 {strides = array<i32>} : memref<1x128xf32, #tpu.memory_space<vmem>>, vector<1x128xf32>,
    %c0_31 = arith.constant 0 : index
    %c0_32 = arith.constant 0 : index
    %103 = vector.load %arg10[%c0_31, %c0_32] : memref<1x128xf32, #tpu.memory_space<vmem>>, vector<1x128xf32>
    %c1_i32_33 = arith.constant 1 : i32
    %104 = tpu.dynamic_rotate %55 by %c1_i32_33 dim 1 : vector<16x128xf32>, i32 -> vector<16x128xf32>
    %105 = vector.shape_cast %83 : vector<16x1xf32> to vector<16x1xf32>
    %106 = vector.broadcast %105 : vector<16x1xf32> to vector<16x128xf32>
    %107 = arith.select %6, %106, %104 : vector<16x128xi1>, vector<16x128xf32>
    %cst_34 = arith.constant 0.000000e+00 : f32
    %108 = vector.broadcast %cst_34 : f32 to vector<16x128xf32>
    %109 = arith.select %89, %108, %107 : vector<16x128xi1>, vector<16x128xf32>
    %110 = arith.subf %55, %109 : vector<16x128xf32>
    %111 = arith.mulf %10, %110 : vector<16x128xf32>
    %cst_35 = arith.constant dense<0.000000e+00> : vector<128xf32>
    %112 = vector.multi_reduction <add>, %111, %cst_35 [0] : vector<16x128xf32> to vector<128xf32>
    %113 = vector.shape_cast %112 : vector<128xf32> to vector<1x128xf32>
    %114 = arith.addf %103, %113 : vector<1x128xf32>
    %c0_36 = arith.constant 0 : index
    %c0_37 = arith.constant 0 : index
    %115 = vector.load %arg10[%c0_36, %c0_37] : memref<1x128xf32, #tpu.memory_space<vmem>>, vector<1x128xf32>
    tpu.vector_store %arg10[%c0_36, %c0_37], %114 {strides = array<i32>} : memref<1x128xf32, #tpu.memory_space<vmem>>, vector<1x128xf32>,
    %116 = vector.extract_strided_slice %24 {offsets = [15, 127], sizes = [1, 1], strides = [1, 1]} : vector<16x128xf32> to vector<1x1xf32>
    %c0_38 = arith.constant 0 : index
    %c0_39 = arith.constant 0 : index
    %117 = vector.load %arg8[%c0_38, %c0_39] : memref<1x1xf32, #tpu.memory_space<vmem>>, vector<1x1xf32>
    tpu.vector_store %arg8[%c0_38, %c0_39], %116 {strides = array<i32>} : memref<1x1xf32, #tpu.memory_space<vmem>>, vector<1x1xf32>,
    %c0_i32_40 = arith.constant 0 : i32
    %118 = arith.cmpi eq, %arg1, %c0_i32_40 : i32
    %119 = arith.extui %118 : i1 to i32
    %c0_i32_41 = arith.constant 0 : i32
    %120 = arith.cmpi ne, %119, %c0_i32_41 : i32
    scf.if %120 {
      %c0_42 = arith.constant 0 : index
      %c0_43 = arith.constant 0 : index
      %121 = vector.load %arg9[%c0_42, %c0_43] : memref<1x128xf32, #tpu.memory_space<vmem>>, vector<1x128xf32>
      %cst_44 = arith.constant dense<0.000000e+00> : vector<1xf32>
      %122 = vector.multi_reduction <add>, %121, %cst_44 [1] : vector<1x128xf32> to vector<1xf32>
      %123 = vector.shape_cast %122 : vector<1xf32> to vector<1x1xf32>
      %c0_45 = arith.constant 0 : index
      %c0_46 = arith.constant 0 : index
      %124 = vector.load %arg10[%c0_45, %c0_46] : memref<1x128xf32, #tpu.memory_space<vmem>>, vector<1x128xf32>
      %cst_47 = arith.constant dense<0.000000e+00> : vector<1xf32>
      %125 = vector.multi_reduction <add>, %124, %cst_47 [1] : vector<1x128xf32> to vector<1xf32>
      %126 = vector.shape_cast %125 : vector<1xf32> to vector<1x1xf32>
      %127 = arith.addf %123, %126 : vector<1x1xf32>
      %cst_48 = arith.constant 5.000000e-01 : f32
      %128 = vector.broadcast %cst_48 : f32 to vector<1x1xf32>
      %129 = arith.mulf %128, %127 : vector<1x1xf32>
      %130 = vector.shape_cast %129 : vector<1x1xf32> to vector<1x1x1xf32>
      %131 = vector.shape_cast %130 : vector<1x1x1xf32> to vector<1x1x1xf32>
      %132 = vector.broadcast %131 : vector<1x1x1xf32> to vector<1x8x128xf32>
      %c0_49 = arith.constant 0 : index
      %c0_50 = arith.constant 0 : index
      %c0_51 = arith.constant 0 : index
      %133 = vector.load %arg7[%c0_49, %c0_50, %c0_51] : memref<1x8x128xf32, #tpu.memory_space<vmem>>, vector<1x8x128xf32>
      tpu.vector_store %arg7[%c0_49, %c0_50, %c0_51], %132 {strides = array<i32>} : memref<1x8x128xf32, #tpu.memory_space<vmem>>, vector<1x8x128xf32>,
    } else {
    }
    return
  }
  func.func @transform_0(%arg0: i32, %arg1: i32, %arg2: memref<1xi32, #tpu.memory_space<smem>>) -> (i32, i32) {
    %c0_i32 = arith.constant 0 : i32
    %c0_i32_0 = arith.constant 0 : i32
    %c0_i32_1 = arith.constant 0 : i32
    return %c0_i32, %c0_i32_0 : i32, i32
  }
  func.func @transform_1(%arg0: i32, %arg1: i32, %arg2: memref<1xi32, #tpu.memory_space<smem>>) -> (i32, i32) {
    %c0_i32 = arith.constant 0 : i32
    %c0_i32_0 = arith.constant 0 : i32
    %c0_i32_1 = arith.constant 0 : i32
    return %c0_i32, %c0_i32_0 : i32, i32
  }
  func.func @transform_2(%arg0: i32, %arg1: i32, %arg2: memref<1xi32, #tpu.memory_space<smem>>) -> (i32, i32, i32) {
    %c0_i32 = arith.constant 0 : i32
    %c0_i32_0 = arith.constant 0 : i32
    return %arg0, %arg1, %c0_i32 : i32, i32, i32
  }
  func.func @transform_3(%arg0: i32, %arg1: i32, %arg2: memref<1xi32, #tpu.memory_space<smem>>) -> (i32, i32, i32) {
    %c0_i32 = arith.constant 0 : i32
    %c0_i32_0 = arith.constant 0 : i32
    return %arg0, %arg1, %c0_i32 : i32, i32, i32
  }
  func.func @transform_4(%arg0: i32, %arg1: i32, %arg2: memref<1xi32, #tpu.memory_space<smem>>) -> (i32, i32, i32) {
    %c0_i32 = arith.constant 0 : i32
    %c0_i32_0 = arith.constant 0 : i32
    %c0_i32_1 = arith.constant 0 : i32
    return %arg0, %c0_i32, %c0_i32_0 : i32, i32, i32
  }
}

</mosaic_0001>

<bundles_post_ra>
// kernel: neg.3
= control target key start
LH: loop header
LB: loop body
LE: loop exit
PB: predicated region body
PF: predicated region fallthrough
CT: control target
= control target key end

     0   :  { %s264_s0 = inlined_call_operand.vmem [shape: f32[1,2048], index: 0, kind: input, shape index: {}]   ;;  %s265_s1 = inlined_call_operand.vmem [shape: f32[1,2048], index: 1, kind: output, shape index: {}]  }
   0x1   :  { %v2_v0 = vld [vmem:[%s264_s0] sm:$0x1]  ;;  %v128_v1 = vld [vmem:[%s264_s0 + $0x1] sm:$0x1]  ;;  %v130_v2 = vld [vmem:[%s264_s0 + $0x2] sm:$0x1] }
   0x2   :  { %v5_v3 = vxor.u32 2147483648, %v2_v0  ;;  %v12_v4 = vxor.u32 2147483648, %v128_v1  ;;  %v20_v5 = vxor.u32 2147483648, %v130_v2  ;;  %v132_v6 = vld [vmem:[%s264_s0 + $0x3] sm:$0x1] }
   0x3   :  { %v28_v7 = vxor.u32 2147483648, %v132_v6  ;;  %v134_v8 = vld [vmem:[%s264_s0 + $0x4] sm:$0x1]  ;;  %v136_v9 = vld [vmem:[%s264_s0 + $0x5] sm:$0x1] }
   0x4   :  { %7 = vst [vmem:[%s265_s1] sm:$0x1] %v5_v3  ;;  %129 = vst [vmem:[%s265_s1 + $0x1] sm:$0x1] %v12_v4  ;;  %v36_v10 = vxor.u32 2147483648, %v134_v8  ;;  %v44_v11 = vxor.u32 2147483648, %v136_v9 }
   0x5   :  { %131 = vst [vmem:[%s265_s1 + $0x2] sm:$0x1] %v20_v5  ;;  %v138_v12 = vld [vmem:[%s264_s0 + $0x6] sm:$0x1]  ;;  %v140_v13 = vld [vmem:[%s264_s0 + $0x7] sm:$0x1] }
   0x6   :  { %133 = vst [vmem:[%s265_s1 + $0x3] sm:$0x1] %v28_v7  ;;  %v52_v14 = vxor.u32 2147483648, %v138_v12  ;;  %v60_v15 = vxor.u32 2147483648, %v140_v13  ;;  %v142_v16 = vld [vmem:[%s264_s0 + $0x8] sm:$0x1] }
   0x7   :  { %v144_v17 = vld [vmem:[%s264_s0 + $0x9] sm:$0x1]  ;;  %135 = vst [vmem:[%s265_s1 + $0x4] sm:$0x1] %v36_v10  ;;  %137 = vst [vmem:[%s265_s1 + $0x5] sm:$0x1] %v44_v11 }
   0x8   :  { %v68_v18 = vxor.u32 2147483648, %v142_v16  ;;  %v76_v19 = vxor.u32 2147483648, %v144_v17  ;;  %v146_v20 = vld [vmem:[%s264_s0 + $0xa] sm:$0x1]  ;;  %v148_v21 = vld [vmem:[%s264_s0 + $0xb] sm:$0x1] }
   0x9   :  { %139 = vst [vmem:[%s265_s1 + $0x6] sm:$0x1] %v52_v14  ;;  %141 = vst [vmem:[%s265_s1 + $0x7] sm:$0x1] %v60_v15  ;;  %v84_v22 = vxor.u32 2147483648, %v146_v20  ;;  %v92_v23 = vxor.u32 2147483648, %v148_v21 }
   0xa   :  { %v150_v24 = vld [vmem:[%s264_s0 + $0xc] sm:$0x1]  ;;  %v152_v25 = vld [vmem:[%s264_s0 + $0xd] sm:$0x1]  ;;  %143 = vst [vmem:[%s265_s1 + $0x8] sm:$0x1] %v68_v18 }
   0xb   :  { %145 = vst [vmem:[%s265_s1 + $0x9] sm:$0x1] %v76_v19  ;;  %v100_v26 = vxor.u32 2147483648, %v150_v24  ;;  %v108_v27 = vxor.u32 2147483648, %v152_v25  ;;  %v154_v28 = vld [vmem:[%s264_s0 + $0xe] sm:$0x1] }
   0xc   :  { %v156_v29 = vld [vmem:[%s264_s0 + $0xf] sm:$0x1]  ;;  %147 = vst [vmem:[%s265_s1 + $0xa] sm:$0x1] %v84_v22  ;;  %149 = vst [vmem:[%s265_s1 + $0xb] sm:$0x1] %v92_v23 }
   0xd   :  { %v116_v30 = vxor.u32 2147483648, %v154_v28  ;;  %v124_v31 = vxor.u32 2147483648, %v156_v29  ;;  %151 = vst [vmem:[%s265_s1 + $0xc] sm:$0x1] %v100_v26  ;;  %153 = vst [vmem:[%s265_s1 + $0xd] sm:$0x1] %v108_v27 }
   0xf   :  { %155 = vst [vmem:[%s265_s1 + $0xe] sm:$0x1] %v116_v30  ;;  %157 = vst [vmem:[%s265_s1 + $0xf] sm:$0x1] %v124_v31 }

// kernel: _symmetric_lovasz_batched.1
= control target key start
LH: loop header
LB: loop body
LE: loop exit
PB: predicated region body
PF: predicated region fallthrough
CT: control target
= control target key end

     0   :  { %v474_v0 = vmov 0.0   ;;  %vm475_vm0 = vmmov 0   ;;  %v476_v10 = vmov 127   ;;  %vm24_vm1 = vcmask 0   ;;  %s591_s1 = inlined_call_operand.vmem [shape: bf16[128,128], index: 1, kind: input, shape index: {}]   ;;  %s592_s4 = inlined_call_operand.vmem [shape: bf16[1,16,128], index: 4, kind: input, shape index: {}]   ;;  %s593_s2 = inlined_call_operand.vmem [shape: bf16[16,16], index: 2, kind: input, shape index: {}]   ;;  %s594_s0 = inlined_call_operand.<no memory space> [shape: s32[1], index: 0, kind: input, shape index: {}]   ;;  %s595_s3 = inlined_call_operand.vmem [shape: f32[1,16,128], index: 3, kind: input, shape index: {}]   ;;  %s596_s5 = inlined_call_operand.vmem [shape: f32[1,8,128], index: 5, kind: output, shape index: {}]  }
   0x1   :  { %414 = vmatprep.subr.bf16.mxu0 %v474_v0  ;;  %26 = vst [vmem:[#allocation3] sm:$0x1] %v474_v0  ;;  %27 = vst [vmem:[#allocation4] sm:$0x1] %v474_v0  ;;  %v448_v1 = vld [vmem:[%s591_s1] sm:$0xff]   ;;  %430 = vmatprep.mubr.msk.bf16.mxu0 %vm475_vm0, %v474_v0  ;;  %v449_v2 = vld [vmem:[%s591_s1 + $0x8] sm:$0xff]   ;;  %v28_v20 = vlaneseq  ;;  %s224_s13 = scvt.s32.f32 %s594_s0 }
   0x2   :  { %434 = vmatprep.subr.bf16.mxu1 %v474_v0  ;;  %436 = vmatprep.mubr.msk.bf16.mxu1 %vm475_vm0, %v474_v0  ;;  %v450_v3 = vld [vmem:[%s591_s1 + $0x10] sm:$0xff]   ;;  %v451_v4 = vld [vmem:[%s591_s1 + $0x18] sm:$0xff]   ;;  %v452_v5 = vld [vmem:[%s591_s1 + $0x20] sm:$0xff]   ;;  %v477_v16 = vmov 0   ;;  %25 = vst.msk [vmem:[#allocation2] sm:$0x1] %vm24_vm1, %v474_v0 }
   0x3   :  { %415 = vmatpush3.bf16.msra.mxu0 %v448_v1  ;;  %v453_v6 = vld [vmem:[%s591_s1 + $0x28] sm:$0xff]   ;;  %v454_v7 = vld [vmem:[%s591_s1 + $0x30] sm:$0xff]   ;;  %v455_v8 = vld [vmem:[%s591_s1 + $0x38] sm:$0xff]   ;;  %445 = vset.pattern.permute.xlu0 %v476_v10  ;;  %vm164_vm2 = vcmask 130048   ;;  %v539_v21 = vshrl.u32 %v28_v20, 7  ;;  %v545_v23 = vand.u32 127, %v28_v20  ;;  %v238_v48 = vstv %s224_s13 }
   0x4   :  { %416 = vmatprep.subr.bf16.mxu0 %v474_v0  ;;  %v456_v9 = vld [vmem:[%s592_s4] sm:$0xff]   ;;  %447 = vset.pattern.permute.xlu1 %v477_v16  ;;  %s225_s14 = ssub.f32 512.0, %s224_s13  ;;  %s478_s0 = smov 1   ;;  %vm372_vm6 = vcmask 1040384   ;;  %vm366_vm7 = vcmask 7175  }
   0x5   :  { %v457_v19 = vld [vmem:[%s593_s2] sm:$0xff]   ;;  %v30_v22 = vadd.s32 8, %v539_v21  ;;  %v227_v24 = vmul.u32 128, %v539_v21  ;;  %vm33_vm3 = vcmp.eq.s32.totalorder %v545_v23, 0  ;;  %vm289_vm4 = vcmp.eq.s32.totalorder %v539_v21, 0 }
   0x6   :  { %v251_v29 = vstv %s225_s14  ;;  %vm563_vm5 = vmand %vm33_vm3, %vm289_vm4 }
   0x7   :  { %417 = vmatpush3.bf16.msra.mxu0 %v449_v2  ;;  %v228_v25 = vmul.u32 128, %v30_v22  ;;  %v232_v26 = vadd.s32 %v227_v24, %v545_v23  ;;  %v265_v31 = vcvt.s32.f32 %v227_v24 }
   0x8   :  { %418 = vmatprep.subr.bf16.mxu0 %v474_v0 }
   0x9   :  { %v402_v17 = vld [vmem:[#allocation2] ss:$0 sm:$0xff]  ;;  %v233_v27 = vadd.s32 %v228_v25, %v545_v23  ;;  %v234_v30 = vadd.s32 1, %v232_v26  ;;  %v266_v35 = vcvt.s32.f32 %v228_v25 }
   0xb   :  { %419 = vmatpush3.bf16.msra.mxu0 %v450_v3  ;;  %v235_v42 = vadd.s32 1, %v233_v27  ;;  %v236_v43 = vcvt.s32.f32 %v234_v30 }
   0xc   :  { %420 = vmatprep.subr.bf16.mxu0 %v474_v0 }
   0xd   :  { %v237_v52 = vcvt.s32.f32 %v235_v42 }
   0xf   :  { %421 = vmatpush3.bf16.msra.mxu0 %v451_v4 }
  0x10   :  { %422 = vmatprep.subr.bf16.mxu0 %v474_v0 }
  0x13   :  { %423 = vmatpush3.bf16.msra.mxu0 %v452_v5 }
  0x14   :  { %424 = vmatprep.subr.bf16.mxu0 %v474_v0 }
  0x17   :  { %425 = vmatpush3.bf16.msra.mxu0 %v453_v6 }
  0x18   :  { %426 = vmatprep.subr.bf16.mxu0 %v474_v0 }
  0x1b   :  { %427 = vmatpush3.bf16.msra.mxu0 %v454_v7 }
  0x1c   :  { %428 = vmatprep.subr.bf16.mxu0 %v474_v0 }
  0x1f   :  { %429 = vmatpush3.bf16.msra.mxu0 %v455_v8 }
  0x22   :  { %431 = vmatmul.mubr.bf16.vlgmr.msra.gmra.mrb[0].mxu0 %v456_v9 }
  0xf5   :  { %v144_v11 = vpop.f32.mrb[0].mxu0 }
  0xf6   :  { %v432_v12 = vpop.f32.mrb[1].mxu0 }
  0xf7   :  { %v147_v13 = vpop.f32.mrb[2].mxu0 }
  0xf8   :  { %v433_v14 = vpop.f32.mrb[3].mxu0  ;;  %v151_v15 = vpack.c.bf16 %v147_v13, %v144_v11 }
  0xfa   :  { %156 = vperm.xlu0 %445, %v151_v15  }
  0xfe   :  { %446 = vset.pattern.permute.xlu0 %v477_v16 }
  0xff   :  { %218 = vperm.xlu0 %446, %v402_v17  }
 0x179   :  { %v157_v18 = vpop.permute.xlu0 %156 }
 0x17a   :  { %435 = vmatpush3.bf16.msra.mxu1 %v157_v18 }
 0x17d   :  { %437 = vmatmul.mubr.msk.bf16.vlgmr.msra.gmra.mrb[0].mxu1 %vm164_vm2, %v457_v19 }
 0x17e   :  { %v219_v36 = vpop.permute.xlu0 %218 }
 0x250   :  { %v202_v28 = vpop.f32.mrb[0].mxu1 }
 0x251   :  { %v210_v32 = vadd.f32 %v202_v28, %v144_v11  ;;  %v263_v33 = vadd.f32 %v402_v17, %v202_v28  ;;  %v438_v34 = vpop.f32.mrb[1].mxu1 }
 0x252   :  { %v205_v37 = vpop.f32.mrb[2].mxu1  ;;  %v34_v34 = vld [vmem:[%s595_s3] sm:$0xff] }
 0x253   :  { %v281_v38 = vadd.f32 %v263_v33, %v251_v29  ;;  %v211_v39 = vadd.f32 %v205_v37, %v147_v13  ;;  %v264_v40 = vadd.f32 %v402_v17, %v205_v37  ;;  %v439_v41 = vpop.f32.mrb[3].mxu1  ;;  %v221_v44 = vadd.f32 %v219_v36, %v210_v32 }
 0x254   :  { %v269_v45 = vsub.f32 %v265_v31, %v263_v33  ;;  %v267_v8 = vsub.f32 %v238_v48, %v263_v33 }
 0x255   :  { %458 = vrcp.f32 %v281_v38  ;;  %v270_v46 = vsub.f32 %v266_v35, %v264_v40  ;;  %v282_v47 = vadd.f32 %v264_v40, %v251_v29  ;;  %v550_v49 = vadd.f32 %v219_v36, %v211_v39  ;;  %v35_v36 = vld [vmem:[%s595_s3 + $0x8] sm:$0xff] }
 0x256   :  { %v254_v50 = vadd.f32 %v251_v29, %v221_v44  ;;  %v241_v53 = vsub.f32 %v236_v43, %v221_v44  ;;  %v271_v55 = vadd.f32 %v269_v45, %v238_v48  ;;  %v279_v58 = vsub.f32 %v251_v29, %v269_v45 }
 0x257   :  { %v272_v51 = vadd.f32 %v270_v46, %v238_v48  ;;  %460 = vrcp.f32 %v282_v47  ;;  %v255_v54 = vadd.f32 %v251_v29, %v550_v49  ;;  %v242_v57 = vsub.f32 %v237_v52, %v550_v49 }
 0x258   :  { %462 = vrcp.f32 %v254_v50  ;;  %v243_v56 = vadd.f32 %v241_v53, %v238_v48  ;;  %v280_v61 = vsub.f32 %v251_v29, %v270_v46  ;;  %v252_v3 = vsub.f32 %v251_v29, %v241_v53 }
 0x259   :  { %464 = vrcp.f32 %v272_v51  ;;  %v244_v62 = vadd.f32 %v242_v57, %v238_v48  ;;  %v253_v10 = vsub.f32 %v251_v29, %v242_v57  ;;  %v268_v11 = vsub.f32 %v238_v48, %v264_v40 }
 0x25a   :  { %466 = vrcp.f32 %v255_v54  ;;  %v239_v18 = vsub.f32 %v238_v48, %v221_v44  ;;  %v240_v25 = vsub.f32 %v238_v48, %v550_v49  ;;  %v36_v38 = vmax.f32 %v34_v34, 0.0 }
 0x25b   :  { %468 = vrcp.f32 %v271_v55  ;;  %v37_v40 = vmax.f32 %v35_v36, 0.0 }
 0x25c   :  { %470 = vrcp.f32 %v243_v56 }
 0x25d   :  { %472 = vrcp.f32 %v244_v62 }
 0x25f   :  { %v459_v59 = vpop.eup %458 }
 0x260   :  { %v285_v60 = vmul.f32 %v459_v59, %v279_v58 }
 0x261   :  { %v461_v63 = vpop.eup %460 }
 0x262   :  { %v463_v0 = vpop.eup %462  ;;  %v287_v1 = vsub.f32 1.0, %v285_v60  ;;  %v286_v2 = vmul.f32 %v461_v63, %v280_v61 }
 0x263   :  { %v465_v4 = vpop.eup %464  ;;  %v258_v6 = vmul.f32 %v463_v0, %v252_v3  ;;  %v330_v0 = vld [vmem:[#allocation4] sm:$0x1] }
 0x264   :  { %337 = vperm.xlu1 %447, %v287_v1   ;;  %v288_v5 = vsub.f32 1.0, %v286_v2  ;;  %v467_v7 = vpop.eup %466  ;;  %v276_v16 = vmul.f32 %v465_v4, %v268_v11 }
 0x265   :  { %v469_v9 = vpop.eup %468  ;;  %v260_v13 = vsub.f32 1.0, %v258_v6  ;;  %v259_v14 = vmul.f32 %v467_v7, %v253_v10 }
 0x266   :  { %342 = vperm.xlu0 %446, %v288_v5   ;;  %v275_v12 = vmul.f32 %v469_v9, %v267_v8  ;;  %v471_v17 = vpop.eup %470  ;;  %v278_v20 = vsub.f32 1.0, %v276_v16  ;;  %v298_v8 = vld [vmem:[#allocation3] sm:$0x1] }
 0x267   :  { %v261_v19 = vsub.f32 1.0, %v259_v14  ;;  %v247_v22 = vmul.f32 %v471_v17, %v239_v18  ;;  %v473_v24 = vpop.eup %472  ;;  %v384_v17 = vsub.s32 0, %v539_v21 }
 0x268   :  { %v277_v15 = vsub.f32 1.0, %v275_v12  ;;  %v248_v27 = vmul.f32 %v473_v24, %v240_v25 }
 0x269   :  { %v249_v26 = vsub.f32 1.0, %v247_v22 }
 0x26a   :  { %331 = vrot.lane.b32.xlu0 %v260_v13, %s478_s0  ;;  %305 = vperm.xlu1 %447, %v277_v15   ;;  %v250_v28 = vsub.f32 1.0, %v248_v27 }
 0x26e   :  { %333 = vrot.lane.b32.xlu0 %v261_v19, %s478_s0  ;;  %310 = vperm.xlu1 %447, %v278_v20  }
 0x272   :  { %299 = vrot.lane.b32.xlu1 %v249_v26, %s478_s0 }
 0x276   :  { %301 = vrot.lane.b32.xlu1 %v250_v28, %s478_s0 }
 0x2e3   :  { %v338_v29 = vpop.permute.xlu1 %337 }
 0x2e5   :  { %v343_v30 = vpop.permute.xlu0 %342 }
 0x2e9   :  { %v332_v32 = vpop.permute.xlu0 %331  ;;  %v306_v33 = vpop.permute.xlu1 %305 }
 0x2ea   :  { %v345_v35 = vsel %vm33_vm3, %v338_v29, %v332_v32 }
 0x2eb   :  { %v347_v37 = vsel %vm563_vm5, 0.0, %v345_v35 }
 0x2ec   :  { %v349_v39 = vsub.f32 %v260_v13, %v347_v37 }
 0x2ed   :  { %v334_v41 = vpop.permute.xlu0 %333  ;;  %v311_v42 = vpop.permute.xlu1 %310 }
 0x2ee   :  { %v346_v43 = vsel %vm33_vm3, %v343_v30, %v334_v41  ;;  %v351_v45 = vmul.f32 %v349_v39, %v36_v38 }
 0x2ef   :  { %v350_v44 = vsub.f32 %v261_v19, %v346_v43 }
 0x2f1   :  { %v352_v46 = vmul.f32 %v350_v44, %v37_v40  ;;  %v300_v47 = vpop.permute.xlu1 %299 }
 0x2f2   :  { %v313_v50 = vsel %vm33_vm3, %v306_v33, %v300_v47 }
 0x2f3   :  { %v353_v48 = vadd.f32 %v352_v46, %v351_v45  ;;  %v315_v51 = vsel %vm563_vm5, 0.0, %v313_v50 }
 0x2f4   :  { %v317_v53 = vsub.f32 %v249_v26, %v315_v51 }
 0x2f5   :  { %v354_v52 = vrot.slane %v353_v48, 4  ;;  %v302_v54 = vpop.permute.xlu1 %301 }
 0x2f6   :  { %v314_v56 = vsel %vm33_vm3, %v311_v42, %v302_v54  ;;  %v319_v59 = vmul.f32 %v317_v53, %v36_v38 }
 0x2f7   :  { %v355_v55 = vadd.f32 %v354_v52, %v353_v48  ;;  %v318_v57 = vsub.f32 %v250_v28, %v314_v56 }
 0x2f9   :  { %v356_v58 = vrot.slane %v355_v55, 2  ;;  %v320_v60 = vmul.f32 %v318_v57, %v37_v40 }
 0x2fb   :  { %v357_v61 = vadd.f32 %v356_v58, %v355_v55  ;;  %v321_v62 = vadd.f32 %v320_v60, %v319_v59 }
 0x2fd   :  { %v358_v63 = vrot.slane %v357_v61, 1  ;;  %v322_v1 = vrot.slane %v321_v62, 4 }
 0x2ff   :  { %v359_v2 = vadd.f32 %v358_v63, %v357_v61  ;;  %v323_v3 = vadd.f32 %v322_v1, %v321_v62 }
 0x301   :  { %v360_v4 = vadd.f32 %v359_v2, %v330_v0  ;;  %v324_v5 = vrot.slane %v323_v3, 2 }
 0x303   :  { %361 = vst [vmem:[#allocation4] sm:$0x1] %v360_v4  ;;  %v325_v6 = vadd.f32 %v324_v5, %v323_v3 }
 0x305   :  { %v326_v7 = vrot.slane %v325_v6, 1 }
 0x307   :  { %v327_v9 = vadd.f32 %v326_v7, %v325_v6 }
 0x309   :  { %v328_v23 = vadd.f32 %v327_v9, %v298_v8 }
 0x30a   :  { %v376_v10 = vld [vmem:[#allocation4] sm:$0x1] }
 0x30b   :  { %v377_v11 = vsel %vm372_vm6, %v376_v10, 0.0  ;;  %329 = vst [vmem:[#allocation3] sm:$0x1] %v328_v23 }
 0x30c   :  { %378 = vadd.xlane.f32.xlu0 %v377_v11 }
 0x312   :  { %v371_v12 = vld [vmem:[#allocation3] sm:$0x1] }
 0x313   :  { %v373_v13 = vsel %vm372_vm6, %v371_v12, 0.0 }
 0x314   :  { %374 = vadd.xlane.f32.xlu1 %v373_v13 }
 0x322   :  { %363 = vrot.lane.b32.xlu0 %v550_v49, %s478_s0 }
 0x399   :  { %v379_v14 = vpop.xlane.xlu0 %378 }
 0x39d   :  { %v364_v15 = vpop.permute.xlu0 %363 }
 0x39e   :  { %367 = vst.msk [vmem:[#allocation2 - $0x7] sm:$0x80] %vm366_vm7, %v364_v15 }
 0x3a1   :  { %v375_v16 = vpop.xlane.xlu1 %374 }
 0x3a2   :  { %v380_v18 = vadd.f32 %v379_v14, %v375_v16 }
 0x3a4   :  { %v381_v19 = vmul.f32 0.5, %v380_v18 }
 0x3a6   :  { %v385_v20 = vrot.slane %v381_v19, %v384_v17 }
 0x3a8   :  { %386 = vst [vmem:[%s596_s5] sm:$0xff] %v385_v20 }

</bundles_post_ra>
